<compile_context>
chip_gen: v7x
topology: tpu7x:2x2x1
jax: 0.10.0
libtpu: 0.0.40
codegen_flags: <defaults>
</compile_context>

<pallas_src>
import math
import jax
import jax.numpy as jnp
from jax import lax
from jax.experimental import pallas as pl
from jax.experimental.pallas import tpu as pltpu


def _default_vmem_limit():
    # v5e/v6e: 128 MiB physical VMEM -> raise the scoped limit well past the
    # 32 MiB default.  v7x: 64 MiB physical -> stay conservative.
    try:
        cap = pltpu.get_tpu_info().vmem_capacity_bytes
    except Exception:
        cap = 64 * 1024 * 1024
    return int(min(96 * 1024 * 1024, cap * 3 // 4))


_VMEM_LIMIT = _default_vmem_limit()


def _pick_row_tile(n):
    """Largest power-of-two row tile (multiple of 8) that divides n."""
    for t in (1024, 512, 256, 128, 64, 32, 16, 8):
        if n % t == 0:
            return t
    return n  # fall back to full extent (always legal for BlockSpec)


# ----------------------------- linear kernel -----------------------------
def _linear_kernel(x_ref, wt_ref, b_ref, o_ref):
    # x: (tile, Ein), wt: (Ein, Eout) bf16 (pre-transposed), b: (1, Eout) f32.
    # Canonical (M,K)x(K,N) MXU matmul, f32 accumulation; one cast on store
    # (bf16 for the Q/K/V projections, f32 for the output projection).
    x = x_ref[...].astype(jnp.bfloat16)
    acc = jnp.dot(x, wt_ref[...], preferred_element_type=jnp.float32)
    o_ref[...] = (acc + b_ref[...]).astype(o_ref.dtype)


def linear(x, w_t, b, out_dtype=jnp.float32):
    """y = x @ w_t + b where w_t is already (Ein, Eout); b is (1, Eout) f32."""
    N, Ein = x.shape
    Eout = w_t.shape[1]
    tile = _pick_row_tile(N)
    return pl.pallas_call(
        _linear_kernel,
        grid=(N // tile,),
        out_shape=jax.ShapeDtypeStruct((N, Eout), out_dtype),
        in_specs=[
            pl.BlockSpec((tile, Ein), lambda i: (i, 0)),   # streamed rows
            # TODO(synk): for E=4096-class weights on v7x, add an Eout-tiling
            # grid axis and pipeline_mode=pl.Buffered(1) on this resident spec.
            pl.BlockSpec((Ein, Eout), lambda i: (0, 0)),   # weight resident
            pl.BlockSpec((1, Eout), lambda i: (0, 0)),     # bias resident
        ],
        out_specs=pl.BlockSpec((tile, Eout), lambda i: (i, 0)),
        compiler_params=pltpu.CompilerParams(
            dimension_semantics=("parallel",),
            vmem_limit_bytes=_VMEM_LIMIT,
        ),
    )(x, w_t, b)


# --------------------------- attention kernel -----------------------------
def _sdpa_kernel(q_ref, kt_ref, v_ref, ctx_ref, attn_ref=None):
    # q:  (1, H, tq, Dh) bf16  (already scaled by 1/sqrt(Dh) via the Q weights)
    # kt: (1, H, Dh, Tk) bf16  (K pre-transposed -> canonical matmul)
    # v:  (1, H, Tk, Dh) bf16
    q = q_ref[0]
    kt = kt_ref[0]
    v = v_ref[0]

    logits = lax.dot_general(
        q, kt,
        dimension_numbers=(((2,), (1,)), ((0,), (0,))),
        preferred_element_type=jnp.float32,
    )                                                       # (H, tq, Tk) f32

    # TODO(synk): boolean attention mask (masked_fill with -inf) not wired;
    # forward matches the module with mask=None.
    m = jnp.max(logits, axis=-1, keepdims=True)
    e = jnp.exp(logits - m)
    denom = jnp.sum(e, axis=-1, keepdims=True)
    attn = e / denom            # exact divide: these weights are returned
    if attn_ref is not None:
        attn_ref[0] = attn

    ctx = lax.dot_general(
        attn.astype(v.dtype), v,
        dimension_numbers=(((2,), (1,)), ((0,), (0,))),
        preferred_element_type=jnp.float32,
    )                                                       # (H, tq, Dh) f32

    # Merge heads onto the last dim -> lane-dense (tq, E) bf16 store.  This
    # removes the (B,H,Tq,Dh)->(Tq,B,E) XLA transpose before the O projection
    # and avoids narrow Dh-wide masked stores.
    num_heads = ctx.shape[0]
    merged = jnp.concatenate([ctx[h] for h in range(num_heads)], axis=-1)
    ctx_ref[0] = merged.astype(ctx_ref.dtype)


def multihead_attention(q, k, v, params, num_heads, need_weights=True):
    Tq, B, E = q.shape
    Tk = k.shape[0]
    Dh = E // num_heads
    scale = 1.0 / math.sqrt(Dh)

    # One-time weight prep (in real use this would happen at module init):
    # pre-transpose to (Ein, Eout) for the canonical MXU feed, bf16 operands,
    # and fold 1/sqrt(Dh) into the Q projection (cheaper than scaling logits).
    wq_t = (params["wq"] * scale).T.astype(jnp.bfloat16)
    wk_t = params["wk"].T.astype(jnp.bfloat16)
    wv_t = params["wv"].T.astype(jnp.bfloat16)
    wo_t = params["wo"].T.astype(jnp.bfloat16)
    bq = (params["bq"] * scale).reshape(1, E).astype(jnp.float32)
    bk = params["bk"].reshape(1, E).astype(jnp.float32)
    bv = params["bv"].reshape(1, E).astype(jnp.float32)
    bo = params["bo"].reshape(1, E).astype(jnp.float32)

    # Projections emit bf16 directly (no extra XLA cast pass before SDPA).
    qp = linear(q.reshape(-1, E), wq_t, bq, out_dtype=jnp.bfloat16)
    kp = linear(k.reshape(-1, E), wk_t, bk, out_dtype=jnp.bfloat16)
    vp = linear(v.reshape(-1, E), wv_t, bv, out_dtype=jnp.bfloat16)

    # Head-major relayout in bf16 (half the bytes of the previous f32 version);
    # K goes in already transposed to (B, H, Dh, Tk) so QK^T is canonical.
    # TODO(synk): for production E (multiple of 128) fold this relayout into
    # the SDPA BlockSpec index_maps; at toy Dh=8 it violates the (8,128) rule.
    qh = qp.reshape(Tq, B, num_heads, Dh).transpose(1, 2, 0, 3)   # (B,H,Tq,Dh)
    khT = kp.reshape(Tk, B, num_heads, Dh).transpose(1, 2, 3, 0)  # (B,H,Dh,Tk)
    vh = vp.reshape(Tk, B, num_heads, Dh).transpose(1, 2, 0, 3)   # (B,H,Tk,Dh)

    tq = _pick_row_tile(Tq)
    grid = (B, Tq // tq)

    ctx_shape = jax.ShapeDtypeStruct((B, Tq, E), jnp.bfloat16)
    ctx_spec = pl.BlockSpec((1, tq, E), lambda b, i: (b, i, 0))
    if need_weights:
        out_shape = (ctx_shape,
                     jax.ShapeDtypeStruct((B, num_heads, Tq, Tk), jnp.float32))
        out_specs = (ctx_spec,
                     pl.BlockSpec((1, num_heads, tq, Tk),
                                  lambda b, i: (b, 0, i, 0)))
    else:
        out_shape = ctx_shape
        out_specs = ctx_spec

    # TODO(synk): at long sequence lengths (esp. v7x 64 MiB VMEM) switch to
    # flash-style Tk tiling with an online-softmax accumulator and per-head
    # grouping; the full-Tk per-step block is only viable at these sizes.
    sdpa_out = pl.pallas_call(
        _sdpa_kernel,
        grid=grid,
        out_shape=out_shape,
        in_specs=[
            pl.BlockSpec((1, num_heads, tq, Dh), lambda b, i: (b, 0, i, 0)),
            pl.BlockSpec((1, num_heads, Dh, Tk), lambda b, i: (b, 0, 0, 0)),
            pl.BlockSpec((1, num_heads, Tk, Dh), lambda b, i: (b, 0, 0, 0)),
        ],
        out_specs=out_specs,
        compiler_params=pltpu.CompilerParams(
            dimension_semantics=("parallel", "parallel"),
            vmem_limit_bytes=_VMEM_LIMIT,
        ),
    )(qh, khT, vh)

    if need_weights:
        ctx, attn_w = sdpa_out
    else:
        ctx, attn_w = sdpa_out, None

    # Output projection consumes the lane-dense (B*Tq, E) bf16 context; the
    # only remaining relayout is the final (B,Tq,E)->(Tq,B,E) of the result.
    out = linear(ctx.reshape(B * Tq, E), wo_t, bo, out_dtype=jnp.float32)
    out = out.reshape(B, Tq, E).transpose(1, 0, 2)
    return out, attn_w


# ------------------------- parameter initialization ------------------------
def init_params(key, embed_dim):
    # xavier_uniform_ per separate Linear weight (gain=1), zero biases —
    # matches the module's _reset_parameters (4 separate nn.Linear layers).
    bound = math.sqrt(6.0 / (embed_dim + embed_dim))
    ks = jax.random.split(key, 4)

    def w(k):
        return jax.random.uniform(
            k, (embed_dim, embed_dim), jnp.float32, minval=-bound, maxval=bound
        )

    z = jnp.zeros((embed_dim,), jnp.float32)
    return {
        "wq": w(ks[0]), "bq": z,
        "wk": w(ks[1]), "bk": z,
        "wv": w(ks[2]), "bv": z,
        "wo": w(ks[3]), "bo": z,
    }


# ----------------------------------- main ----------------------------------
if __name__ == "__main__":
    T, B, E, H = 8, 2, 32, 4

    key = jax.random.PRNGKey(0)
    kq, kk, kv, kparams = jax.random.split(key, 4)
    q = jax.random.normal(kq, (T, B, E), jnp.float32)
    k = jax.random.normal(kk, (T, B, E), jnp.float32)
    v = jax.random.normal(kv, (T, B, E), jnp.float32)
    params = init_params(kparams, E)

    out, attn_w = multihead_attention(q, k, v, params, H, need_weights=True)
    jax.block_until_ready((out, attn_w))

    # reference check in plain JAX (full f32)
    def ref(q, k, v, params, num_heads):
        Tq, Bb, Ee = q.shape
        Dh = Ee // num_heads
        qp = q.reshape(-1, Ee) @ params["wq"].T + params["bq"]
        kp_ = k.reshape(-1, Ee) @ params["wk"].T + params["bk"]
        vp = v.reshape(-1, Ee) @ params["wv"].T + params["bv"]
        qh = qp.reshape(Tq, Bb, num_heads, Dh).transpose(1, 2, 0, 3)
        kh = kp_.reshape(Tq, Bb, num_heads, Dh).transpose(1, 2, 0, 3)
        vh = vp.reshape(Tq, Bb, num_heads, Dh).transpose(1, 2, 0, 3)
        logits = jnp.einsum("bhqd,bhkd->bhqk", qh, kh) / math.sqrt(Dh)
        a = jax.nn.softmax(logits, axis=-1)
        oh = jnp.einsum("bhqk,bhkd->bhqd", a, vh)
        oc = oh.transpose(2, 0, 1, 3).reshape(Tq * Bb, Ee)
        o = (oc @ params["wo"].T + params["bo"]).reshape(Tq, Bb, Ee)
        return o, a

    out_ref, attn_ref = ref(q, k, v, params, H)
    assert out.shape == (T, B, E) and attn_w.shape == (B, H, T, T)
    # Tolerances are looser than 1e-5 because MXU operands are fed in bf16
    # (accumulation and softmax stay f32); the reference is full f32.
    assert jnp.allclose(out, out_ref, atol=5e-2, rtol=5e-2)
    assert jnp.allclose(attn_w, attn_ref, atol=5e-2, rtol=5e-2)

    print("KERNEL_OK")
</pallas_src>

<mosaic_0001>
module attributes {stable_mosaic.version = 11 : i64} {
  func.func @_linear_kernel(%arg0: i32, %arg1: memref<16x32xf32, #tpu.memory_space<vmem>>, %arg2: memref<32x32xbf16, #tpu.memory_space<vmem>>, %arg3: memref<1x32xf32, #tpu.memory_space<vmem>>, %arg4: memref<16x32xbf16, #tpu.memory_space<vmem>>) attributes {dimension_semantics = [#tpu.dimension_semantics<parallel>], iteration_bounds = array<i64: 1>, scalar_prefetch = 0 : i64, scratch_operands = 0 : i64, tpu.core_type = #tpu.core_type<tc>, window_params = [{transform_indices = @transform_0, window_bounds = array<i64: 16, 32>}, {pipeline_mode = #tpu.pipeline_mode<synchronous>, transform_indices = @transform_1, window_bounds = array<i64: 32, 32>}, {pipeline_mode = #tpu.pipeline_mode<synchronous>, transform_indices = @transform_2, window_bounds = array<i64: 1, 32>}, {transform_indices = @transform_3, window_bounds = array<i64: 16, 32>}]} {
    %c0 = arith.constant 0 : index
    %c0_0 = arith.constant 0 : index
    %0 = vector.load %arg1[%c0, %c0_0] : memref<16x32xf32, #tpu.memory_space<vmem>>, vector<16x32xf32>
    %1 = arith.truncf %0 : vector<16x32xf32> to vector<16x32xbf16>
    %c0_1 = arith.constant 0 : index
    %c0_2 = arith.constant 0 : index
    %2 = vector.load %arg2[%c0_1, %c0_2] : memref<32x32xbf16, #tpu.memory_space<vmem>>, vector<32x32xbf16>
    %cst = arith.constant dense<0.000000e+00> : vector<16x32xf32>
    %3 = tpu.matmul %1, %2, %cst {dimension_numbers = #tpu.dot_dimension_numbers<[1], [0], [0], [1], [0, 0, 1, 1], [], []>} : vector<16x32xbf16>, vector<32x32xbf16>, vector<16x32xf32> -> vector<16x32xf32>
    %c0_3 = arith.constant 0 : index
    %c0_4 = arith.constant 0 : index
    %4 = vector.load %arg3[%c0_3, %c0_4] : memref<1x32xf32, #tpu.memory_space<vmem>>, vector<1x32xf32>
    %5 = vector.broadcast %4 : vector<1x32xf32> to vector<16x32xf32>
    %6 = arith.addf %3, %5 : vector<16x32xf32>
    %7 = arith.truncf %6 : vector<16x32xf32> to vector<16x32xbf16>
    %c0_5 = arith.constant 0 : index
    %c0_6 = arith.constant 0 : index
    %8 = vector.load %arg4[%c0_5, %c0_6] : memref<16x32xbf16, #tpu.memory_space<vmem>>, vector<16x32xbf16>
    tpu.vector_store %arg4[%c0_5, %c0_6], %7 {strides = array<i32>} : memref<16x32xbf16, #tpu.memory_space<vmem>>, vector<16x32xbf16>,
    return
  }
  func.func @transform_0(%arg0: i32) -> (i32, i32) {
    %c0_i32 = arith.constant 0 : i32
    %c0_i32_0 = arith.constant 0 : i32
    return %arg0, %c0_i32 : i32, i32
  }
  func.func @transform_1(%arg0: i32) -> (i32, i32) {
    %c0_i32 = arith.constant 0 : i32
    %c0_i32_0 = arith.constant 0 : i32
    %c0_i32_1 = arith.constant 0 : i32
    return %c0_i32, %c0_i32_0 : i32, i32
  }
  func.func @transform_2(%arg0: i32) -> (i32, i32) {
    %c0_i32 = arith.constant 0 : i32
    %c0_i32_0 = arith.constant 0 : i32
    %c0_i32_1 = arith.constant 0 : i32
    return %c0_i32, %c0_i32_0 : i32, i32
  }
  func.func @transform_3(%arg0: i32) -> (i32, i32) {
    %c0_i32 = arith.constant 0 : i32
    %c0_i32_0 = arith.constant 0 : i32
    return %arg0, %c0_i32 : i32, i32
  }
}

</mosaic_0001>

<bundles_post_ra>
// kernel: tpu_custom_call.1
= control target key start
LH: loop header
LB: loop body
LE: loop exit
PB: predicated region body
PF: predicated region fallthrough
CT: control target
= control target key end

     0   :  { %8 = vsyncpa [#allocation3], 0  ;;  %s320_s0 = inlined_call_operand.hbm [shape: f32[16,32], index: 0, kind: input, shape index: {}]   ;;  %s321_s1 = inlined_call_operand.hbm [shape: bf16[32,32], index: 1, kind: input, shape index: {}]   ;;  %s322_s2 = inlined_call_operand.vmem [shape: f32[1,32], index: 2, kind: input, shape index: {}]   ;;  %s323_s3 = inlined_call_operand.hbm [shape: bf16[16,32], index: 3, kind: output, shape index: {}]  }
   0x1   :  { %9 = vsyncpa [#allocation6], 0 }
   0x2   :  { %10 = vsyncpa [#allocation4], 0  ;;  %s246_s12 = smov [#allocation2]   ;;  %s174_s16 = scalar_lea.hbm %s320_s0, 256 }
   0x3   :  { %s16_s13 = sshll.u32 %s246_s12, 4  ;;  %p175_p0 = scmp.ne.s32.totalorder %s320_s0, %s174_s16  ;;  %s17_s13 = int_to_ptr.vmem [resolvable:$true] %s16_s13 }
   0x4   :  { %p178_p1 = scmp.lt.u32.totalorder %s174_s16, %s320_s0 }
   0x6   :  { %p180_p2 = pnand %p178_p1, %p175_p0 }
   0x8   :  { %183 = shalt.err (!%p180_p2)
}
   0x9   :  { %s184_s21 = scalar_lea.vmem %s17_s13, 256  ;;  %p189_p4 = scmp.lt.s32.totalorder %s17_s13, %s17_s13 }
   0xa   :  { %p185_p3 = scmp.ne.s32.totalorder %s17_s13, %s184_s21  ;;  %p190_p5 = scmp.lt.s32.totalorder %s184_s21, %s184_s21 }
   0xc   :  { %p191_p6 = por %p190_p5, %p189_p4 }
   0xe   :  { %p192_p7 = pnand %p191_p6, %p185_p3 }
  0x10   :  { %195 = shalt.err (!%p192_p7)
}
  0x11   :  { %s247_s22 = smov 128   ;;  %s248_s23 = smov 8  }
  0x12   :  { %22 = dma.hbm_to_vmem [thread:$0]  %s320_s0, 256, %s17_s13, [#allocation3], %s247_s22, %s247_s22, %s248_s23  }
  0x13   :  { %s249_s26 = smov [#allocation5]   ;;  %s196_s30 = scalar_lea.hbm %s321_s1, 256 }
  0x14   :  { %s28_s27 = sshll.u32 %s249_s26, 4  ;;  %p197_p8 = scmp.ne.s32.totalorder %s321_s1, %s196_s30  ;;  %s29_s27 = int_to_ptr.vmem [resolvable:$true] %s28_s27 }
  0x15   :  { %p200_p9 = scmp.lt.u32.totalorder %s196_s30, %s321_s1 }
  0x17   :  { %p202_p10 = pnand %p200_p9, %p197_p8 }
  0x19   :  { %205 = shalt.err (!%p202_p10)
}
  0x1a   :  { %s206_s8 = scalar_lea.vmem %s29_s27, 256  ;;  %p211_p12 = scmp.lt.s32.totalorder %s29_s27, %s29_s27 }
  0x1b   :  { %p207_p11 = scmp.ne.s32.totalorder %s29_s27, %s206_s8  ;;  %p212_p13 = scmp.lt.s32.totalorder %s206_s8, %s206_s8 }
  0x1d   :  { %p213_p0 = por %p212_p13, %p211_p12 }
  0x1f   :  { %p214_p1 = pnand %p213_p0, %p207_p11 }
  0x21   :  { %217 = shalt.err (!%p214_p1)
}
  0x22   :  { %s250_s0 = smov 64   ;;  %s251_s9 = smov 4  }
  0x23   :  { %34 = dma.hbm_to_vmem [thread:$0]  %s321_s1, 256, %s29_s27, [#allocation6], %s250_s0, %s250_s0, %s251_s9  }
  0x24   :  { %240 = dma.done.wait [#allocation3], 256  }
  0x25   :  { %241 = vsyncadd [#allocation3], 4294967040 }
  0x26   :  { %242 = dma.done.wait [#allocation6], 256  }
  0x27   :  { %243 = vsyncadd [#allocation6], 4294967040  ;;  %v252_v0 = vmov 0.0   ;;  %vm253_vm0 = vmmov 0   ;;  %v172_v1 = vld [vmem:[#allocation5] sm:$0xff]   ;;  %v173_v2 = vld [vmem:[#allocation5 + $0x8] sm:$0xff]  }
  0x28   :  { %155 = vmatprep.subr.bf16.mxu0 %v252_v0  ;;  %159 = vmatprep.mubr.msk.bf16.mxu0 %vm253_vm0, %v252_v0  ;;  %v44_v3 = vld [vmem:[#allocation2] sm:$0xff]  ;;  %v45_v4 = vld [vmem:[#allocation2 + $0x8] sm:$0xff]  ;;  %vm70_vm1 = vcmask 261120   ;;  %vm123_vm2 = vcmask 257024   ;;  %s254_s13 = smov [#allocation7]  }
  0x29   :  { %156 = vmatpush3.bf16.msra.mxu0 %v172_v1  ;;  %v46_v5 = vpack.c.bf16 %v45_v4, %v44_v3  ;;  %v144_v6 = vld [vmem:[%s322_s2] ss:$0 sm:$0xff]  ;;  %s131_s14 = sshll.u32 %s254_s13, 4  ;;  %s132_s14 = int_to_ptr.vmem [resolvable:$true] %s131_s14 }
  0x2a   :  { %157 = vmatprep.subr.bf16.mxu0 %v252_v0  ;;  %s218_s15 = scalar_lea.vmem %s132_s14, 128  ;;  %p223_p3 = scmp.lt.s32.totalorder %s132_s14, %s132_s14 }
  0x2b   :  { %p219_p2 = scmp.ne.s32.totalorder %s132_s14, %s218_s15  ;;  %p224_p4 = scmp.lt.s32.totalorder %s218_s15, %s218_s15 }
  0x2d   :  { %158 = vmatpush3.bf16.msra.mxu0 %v173_v2  ;;  %p225_p5 = por %p224_p4, %p223_p3 }
  0x2f   :  { %p226_p6 = pnand %p225_p5, %p219_p2 }
  0x30   :  { %160 = vmatmul.mubr.msk.bf16.vlgmr.msra.gmra.mrb[0].mxu0 %vm70_vm1, %v46_v5 }
 0x103   :  { %v108_v7 = vpop.f32.mrb[0].mxu0 }
 0x104   :  { %v109_v8 = vadd.f32 %v144_v6, %v108_v7  ;;  %v161_v9 = vpop.f32.mrb[1].mxu0 }
 0x105   :  { %v111_v10 = vpop.f32.mrb[2].mxu0 }
 0x106   :  { %v150_v11 = vpack.c.bf16 %v109_v8, %v109_v8  ;;  %v112_v12 = vadd.f32 %v144_v6, %v111_v10  ;;  %v162_v13 = vpop.f32.mrb[3].mxu0 }
 0x108   :  { %v151_v14 = vpack.c.bf16 %v112_v12, %v112_v12  ;;  %124 = vst.msk [vmem:[#allocation7] sm:$0xf] %vm123_vm2, %v150_v11 }
 0x10a   :  { %125 = vst.msk [vmem:[#allocation7 + $0x4] sm:$0xf] %vm123_vm2, %v151_v14 }
 0x10b   :  { %229 = shalt.err (!%p226_p6)
}
 0x10c   :  { %s230_s17 = scalar_lea.hbm %s323_s3, 128 }
 0x10d   :  { %p231_p7 = scmp.ne.s32.totalorder %s323_s3, %s230_s17  ;;  %p234_p8 = scmp.lt.u32.totalorder %s230_s17, %s323_s3 }
 0x10f   :  { %p236_p9 = pnand %p234_p8, %p231_p7 }
 0x111   :  { %239 = shalt.err (!%p236_p9)
}
 0x112   :  { %137 = dma.vmem_to_hbm [thread:$0]  %s132_s14, 128, %s323_s3, [#allocation4], %s250_s0, %s250_s0, %s251_s9  }
 0x113   :  { %244 = dma.done.wait [#allocation4], 128  }
 0x114   :  { %245 = vsyncadd [#allocation4], 4294967168 }
 0x115   :  { %141 = vsyncpa [#allocation3], 1 }
 0x116   :  { %142 = vsyncpa [#allocation6], 1 }
 0x117   :  { %143 = vsyncpa [#allocation4], 1 }

</bundles_post_ra>
